<compile_context>
chip_gen: v7x
topology: tpu7x:2x2x1
jax: 0.10.0
libtpu: 0.0.40
codegen_flags: <defaults>
</compile_context>

<pallas_src>
import functools

import jax
import jax.numpy as jnp
from jax.experimental import pallas as pl
from jax.experimental.pallas import tpu as pltpu


def _aws_kernel(bias_ref, w_ref, x1_hbm, x2_hbm, out_ref, xbuf, sem, *, row):
    """Single invocation (no grid).

    bias_ref : (2,)   f32  SMEM   [b1, b2]
    w_ref    : (2, D) f32  VMEM   [w1; w2]
    x1_hbm   : (N, D) any  HBM    (raw ref, DMA'd manually)
    x2_hbm   : (N, D) any  HBM
    out_ref  : (1, 2) f32  VMEM   normalized (lambda1, lambda2) of the last row
    xbuf     : (2, D) VMEM scratch (dtype of x1/x2)
    sem      : (2,)   DMA semaphores
    """
    # Fetch only the last row of each activation matrix straight from HBM;
    # both DMAs in flight concurrently.
    cp1 = pltpu.make_async_copy(
        x1_hbm.at[pl.ds(row, 1), :], xbuf.at[pl.ds(0, 1), :], sem.at[0])
    cp2 = pltpu.make_async_copy(
        x2_hbm.at[pl.ds(row, 1), :], xbuf.at[pl.ds(1, 1), :], sem.at[1])
    cp1.start()
    cp2.start()
    cp1.wait()
    cp2.wait()

    # f32 accumulation; VPU multiply + XLU lane-sum reduce (no MXU matvec).
    x1v = xbuf[pl.ds(0, 1), :].astype(jnp.float32)        # (1, D)
    x2v = xbuf[pl.ds(1, 1), :].astype(jnp.float32)        # (1, D)
    w1v = w_ref[pl.ds(0, 1), :]                           # (1, D) f32
    w2v = w_ref[pl.ds(1, 1), :]                           # (1, D) f32

    s1 = jnp.sum(x1v * w1v, axis=-1, keepdims=True)       # (1, 1)
    s2 = jnp.sum(x2v * w2v, axis=-1, keepdims=True)       # (1, 1)

    lam1 = jax.nn.sigmoid(s1 + bias_ref[0])               # (1, 1)
    lam2 = jax.nn.sigmoid(s2 + bias_ref[1])               # (1, 1)

    # L1 normalize across the pair (matches F.normalize(p=1, eps=1e-12)).
    # abs() is redundant on sigmoid outputs but kept for exact reference semantics.
    denom = jnp.maximum(jnp.abs(lam1) + jnp.abs(lam2), 1e-12)
    inv = 1.0 / denom

    # Single merged writeback: one (1, 2) store.
    out_ref[...] = jnp.concatenate([lam1 * inv, lam2 * inv], axis=-1).astype(
        out_ref.dtype)


def pack_aws_params(w1, w2, b1, b2):
    """Pack module parameters ONCE (init/param-load time), off the hot path.

    w1, w2: (D,) linear weights (nn.Linear(D, 1).weight flattened).
    b1, b2: scalar biases.
    Returns (w_packed (2, D) f32, b_packed (2,) f32).
    """
    D = w1.shape[-1]
    w_packed = jnp.stack(
        [jnp.asarray(w1, jnp.float32).reshape(D),
         jnp.asarray(w2, jnp.float32).reshape(D)], axis=0)            # (2, D)
    b_packed = jnp.stack([jnp.asarray(b1), jnp.asarray(b2)]).astype(jnp.float32)
    return w_packed, b_packed


def aws_forward(x1, x2, w_packed, b_packed):
    """AWS forward. Returns ONLY the last row's normalized pair (w[-1,0], w[-1,1]),
    exactly like the PyTorch module's forward. Callers wanting all (N, 2)
    normalized weights must not use this kernel.
    """
    N, D = x1.shape
    assert x2.shape == (N, D), "x1/x2 must have identical shapes"
    assert x1.dtype == x2.dtype, "x1/x2 must share a dtype"
    assert w_packed.shape == (2, D) and w_packed.dtype == jnp.float32
    assert b_packed.shape == (2,)

    kernel = functools.partial(_aws_kernel, row=N - 1)

    out = pl.pallas_call(
        kernel,
        in_specs=[
            pl.BlockSpec(memory_space=pltpu.MemorySpace.SMEM),  # biases (2,)
            pl.BlockSpec(memory_space=pltpu.MemorySpace.VMEM),  # weight slab (2, D)
            pl.BlockSpec(memory_space=pl.ANY),                  # x1 stays in HBM
            pl.BlockSpec(memory_space=pl.ANY),                  # x2 stays in HBM
        ],
        out_specs=pl.BlockSpec(memory_space=pltpu.MemorySpace.VMEM),
        out_shape=jax.ShapeDtypeStruct((1, 2), jnp.float32),
        scratch_shapes=[
            pltpu.VMEM((2, D), x1.dtype),          # last rows of x1, x2
            pltpu.SemaphoreType.DMA((2,)),
        ],
    )(b_packed, w_packed, x1, x2)

    return out[0, 0], out[0, 1]


def aws_reference(x1, x2, w1, w2, b1, b2):
    x1f = x1.astype(jnp.float32)
    x2f = x2.astype(jnp.float32)
    lam1 = jax.nn.sigmoid(x1f @ w1.astype(jnp.float32) + b1)
    lam2 = jax.nn.sigmoid(x2f @ w2.astype(jnp.float32) + b2)
    w = jnp.stack([lam1, lam2], axis=-1)
    w = w / jnp.maximum(jnp.sum(jnp.abs(w), axis=-1, keepdims=True), 1e-12)
    return w[-1, 0], w[-1, 1]


if __name__ == "__main__":
    # Shapes consistent with the module: concat=2, nhid=32 -> D=64; N=8 nodes.
    concat, nhid, N = 2, 32, 8
    D = concat * nhid

    key = jax.random.PRNGKey(0)
    k_x1, k_x2, k_w1, k_w2, k_b = jax.random.split(key, 5)

    x1 = jax.random.normal(k_x1, (N, D), dtype=jnp.float32)
    x2 = jax.random.normal(k_x2, (N, D), dtype=jnp.float32)

    # nn.Linear(D, 1): weight (1, D) stored flat as (D,), bias (1,) as scalar.
    bound = 1.0 / (D ** 0.5)
    w1 = jax.random.uniform(k_w1, (D,), jnp.float32, -bound, bound)
    w2 = jax.random.uniform(k_w2, (D,), jnp.float32, -bound, bound)
    b = jax.random.uniform(k_b, (2,), jnp.float32, -bound, bound)
    b1, b2 = b[0], b[1]

    # Parameter packing happens once, off the per-call hot path.
    w_packed, b_packed = pack_aws_params(w1, w2, b1, b2)

    out0, out1 = aws_forward(x1, x2, w_packed, b_packed)
    jax.block_until_ready((out0, out1))

    ref0, ref1 = aws_reference(x1, x2, w1, w2, b1, b2)
    assert jnp.allclose(out0, ref0, atol=1e-5, rtol=1e-5)
    assert jnp.allclose(out1, ref1, atol=1e-5, rtol=1e-5)

    # Second case: N not a multiple of 8, larger D, bf16 activations kept bf16 in HBM.
    N2, D2 = 5, 384
    kk = jax.random.split(jax.random.PRNGKey(0), 6)
    x1b = jax.random.normal(kk[0], (N2, D2), dtype=jnp.bfloat16)
    x2b = jax.random.normal(kk[1], (N2, D2), dtype=jnp.bfloat16)
    w1b = jax.random.uniform(kk[2], (D2,), jnp.float32, -0.05, 0.05)
    w2b = jax.random.uniform(kk[3], (D2,), jnp.float32, -0.05, 0.05)
    bb = jax.random.uniform(kk[4], (2,), jnp.float32, -0.05, 0.05)

    wp2, bp2 = pack_aws_params(w1b, w2b, bb[0], bb[1])
    o0b, o1b = aws_forward(x1b, x2b, wp2, bp2)
    jax.block_until_ready((o0b, o1b))
    r0b, r1b = aws_reference(x1b, x2b, w1b, w2b, bb[0], bb[1])
    assert jnp.allclose(o0b, r0b, atol=1e-4, rtol=1e-4)
    assert jnp.allclose(o1b, r1b, atol=1e-4, rtol=1e-4)

    print("KERNEL_OK")
</pallas_src>

<mosaic_0001>
module attributes {stable_mosaic.version = 11 : i64} {
  func.func @_aws_kernel(%arg0: memref<2xf32, #tpu.memory_space<smem>>, %arg1: memref<2x64xf32, #tpu.memory_space<vmem>>, %arg2: memref<8x64xf32, #tpu.memory_space<any>>, %arg3: memref<8x64xf32, #tpu.memory_space<any>>, %arg4: memref<1x2xf32, #tpu.memory_space<vmem>>, %arg5: memref<2x64xf32, #tpu.memory_space<vmem>>, %arg6: memref<2x!tpu.dma_semaphore, #tpu.memory_space<semaphore_mem>>) attributes {dimension_semantics = [], scalar_prefetch = 0 : i64, scratch_operands = 2 : i64, tpu.core_type = #tpu.core_type<tc>} {
    %c0_i32 = arith.constant 0 : i32
    %c7_i32 = arith.constant 7 : i32
    %c0_i32_0 = arith.constant 0 : i32
    %0 = tpu.memref_slice %arg2[%c7_i32, %c0_i32_0] : memref<8x64xf32, #tpu.memory_space<any>> -> memref<1x64xf32, #tpu.memory_space<any>>
    %c0_i32_1 = arith.constant 0 : i32
    %c0_i32_2 = arith.constant 0 : i32
    %1 = tpu.memref_slice %arg5[%c0_i32_1, %c0_i32_2] : memref<2x64xf32, #tpu.memory_space<vmem>> -> memref<1x64xf32, #tpu.memory_space<vmem>>
    %2 = tpu.memref_slice %arg6[%c0_i32] : memref<2x!tpu.dma_semaphore, #tpu.memory_space<semaphore_mem>> -> memref<1x!tpu.dma_semaphore, #tpu.memory_space<semaphore_mem>>
    %3 = tpu.memref_squeeze %2 : memref<1x!tpu.dma_semaphore, #tpu.memory_space<semaphore_mem>> -> memref<!tpu.dma_semaphore, #tpu.memory_space<semaphore_mem>>
    tpu.enqueue_dma source(%0 : memref<1x64xf32, #tpu.memory_space<any>>) target(%1 : memref<1x64xf32, #tpu.memory_space<vmem>>) target_semaphore(%3 : memref<!tpu.dma_semaphore, #tpu.memory_space<semaphore_mem>>)
    %c1_i32 = arith.constant 1 : i32
    %c7_i32_3 = arith.constant 7 : i32
    %c0_i32_4 = arith.constant 0 : i32
    %4 = tpu.memref_slice %arg3[%c7_i32_3, %c0_i32_4] : memref<8x64xf32, #tpu.memory_space<any>> -> memref<1x64xf32, #tpu.memory_space<any>>
    %c1_i32_5 = arith.constant 1 : i32
    %c0_i32_6 = arith.constant 0 : i32
    %5 = tpu.memref_slice %arg5[%c1_i32_5, %c0_i32_6] : memref<2x64xf32, #tpu.memory_space<vmem>> -> memref<1x64xf32, #tpu.memory_space<vmem>>
    %6 = tpu.memref_slice %arg6[%c1_i32] : memref<2x!tpu.dma_semaphore, #tpu.memory_space<semaphore_mem>> -> memref<1x!tpu.dma_semaphore, #tpu.memory_space<semaphore_mem>>
    %7 = tpu.memref_squeeze %6 : memref<1x!tpu.dma_semaphore, #tpu.memory_space<semaphore_mem>> -> memref<!tpu.dma_semaphore, #tpu.memory_space<semaphore_mem>>
    tpu.enqueue_dma source(%4 : memref<1x64xf32, #tpu.memory_space<any>>) target(%5 : memref<1x64xf32, #tpu.memory_space<vmem>>) target_semaphore(%7 : memref<!tpu.dma_semaphore, #tpu.memory_space<semaphore_mem>>)
    %c0_i32_7 = arith.constant 0 : i32
    %c7_i32_8 = arith.constant 7 : i32
    %c0_i32_9 = arith.constant 0 : i32
    %8 = tpu.memref_slice %arg2[%c7_i32_8, %c0_i32_9] : memref<8x64xf32, #tpu.memory_space<any>> -> memref<1x64xf32, #tpu.memory_space<any>>
    %c0_i32_10 = arith.constant 0 : i32
    %c0_i32_11 = arith.constant 0 : i32
    %9 = tpu.memref_slice %arg5[%c0_i32_10, %c0_i32_11] : memref<2x64xf32, #tpu.memory_space<vmem>> -> memref<1x64xf32, #tpu.memory_space<vmem>>
    %10 = tpu.memref_slice %arg6[%c0_i32_7] : memref<2x!tpu.dma_semaphore, #tpu.memory_space<semaphore_mem>> -> memref<1x!tpu.dma_semaphore, #tpu.memory_space<semaphore_mem>>
    %11 = tpu.memref_squeeze %10 : memref<1x!tpu.dma_semaphore, #tpu.memory_space<semaphore_mem>> -> memref<!tpu.dma_semaphore, #tpu.memory_space<semaphore_mem>>
    tpu.wait_dma2 semaphore(%11 : memref<!tpu.dma_semaphore, #tpu.memory_space<semaphore_mem>>) src(%8 : memref<1x64xf32, #tpu.memory_space<any>>) dst(%9 : memref<1x64xf32, #tpu.memory_space<vmem>>)
    %c1_i32_12 = arith.constant 1 : i32
    %c7_i32_13 = arith.constant 7 : i32
    %c0_i32_14 = arith.constant 0 : i32
    %12 = tpu.memref_slice %arg3[%c7_i32_13, %c0_i32_14] : memref<8x64xf32, #tpu.memory_space<any>> -> memref<1x64xf32, #tpu.memory_space<any>>
    %c1_i32_15 = arith.constant 1 : i32
    %c0_i32_16 = arith.constant 0 : i32
    %13 = tpu.memref_slice %arg5[%c1_i32_15, %c0_i32_16] : memref<2x64xf32, #tpu.memory_space<vmem>> -> memref<1x64xf32, #tpu.memory_space<vmem>>
    %14 = tpu.memref_slice %arg6[%c1_i32_12] : memref<2x!tpu.dma_semaphore, #tpu.memory_space<semaphore_mem>> -> memref<1x!tpu.dma_semaphore, #tpu.memory_space<semaphore_mem>>
    %15 = tpu.memref_squeeze %14 : memref<1x!tpu.dma_semaphore, #tpu.memory_space<semaphore_mem>> -> memref<!tpu.dma_semaphore, #tpu.memory_space<semaphore_mem>>
    tpu.wait_dma2 semaphore(%15 : memref<!tpu.dma_semaphore, #tpu.memory_space<semaphore_mem>>) src(%12 : memref<1x64xf32, #tpu.memory_space<any>>) dst(%13 : memref<1x64xf32, #tpu.memory_space<vmem>>)
    %c0 = arith.constant 0 : index
    %c0_17 = arith.constant 0 : index
    %16 = vector.load %arg5[%c0, %c0_17] : memref<2x64xf32, #tpu.memory_space<vmem>>, vector<1x64xf32>
    %c1 = arith.constant 1 : index
    %c0_18 = arith.constant 0 : index
    %17 = vector.load %arg5[%c1, %c0_18] : memref<2x64xf32, #tpu.memory_space<vmem>>, vector<1x64xf32>
    %c0_19 = arith.constant 0 : index
    %c0_20 = arith.constant 0 : index
    %18 = vector.load %arg1[%c0_19, %c0_20] : memref<2x64xf32, #tpu.memory_space<vmem>>, vector<1x64xf32>
    %c1_21 = arith.constant 1 : index
    %c0_22 = arith.constant 0 : index
    %19 = vector.load %arg1[%c1_21, %c0_22] : memref<2x64xf32, #tpu.memory_space<vmem>>, vector<1x64xf32>
    %20 = arith.mulf %16, %18 : vector<1x64xf32>
    %cst = arith.constant dense<0.000000e+00> : vector<1xf32>
    %21 = vector.multi_reduction <add>, %20, %cst [1] : vector<1x64xf32> to vector<1xf32>
    %22 = vector.shape_cast %21 : vector<1xf32> to vector<1x1xf32>
    %23 = arith.mulf %17, %19 : vector<1x64xf32>
    %cst_23 = arith.constant dense<0.000000e+00> : vector<1xf32>
    %24 = vector.multi_reduction <add>, %23, %cst_23 [1] : vector<1x64xf32> to vector<1xf32>
    %25 = vector.shape_cast %24 : vector<1xf32> to vector<1x1xf32>
    %c0_24 = arith.constant 0 : index
    %26 = memref.load %arg0[%c0_24] : memref<2xf32, #tpu.memory_space<smem>>
    %27 = vector.broadcast %26 : f32 to vector<1x1xf32>
    %28 = arith.addf %22, %27 : vector<1x1xf32>
    %29 = arith.negf %28 : vector<1x1xf32>
    %30 = math.exp %29 : vector<1x1xf32>
    %cst_25 = arith.constant 1.000000e+00 : f32
    %31 = vector.broadcast %cst_25 : f32 to vector<1x1xf32>
    %32 = arith.addf %31, %30 : vector<1x1xf32>
    %33 = arith.divf %31, %32 : vector<1x1xf32>
    %c1_26 = arith.constant 1 : index
    %34 = memref.load %arg0[%c1_26] : memref<2xf32, #tpu.memory_space<smem>>
    %35 = vector.broadcast %34 : f32 to vector<1x1xf32>
    %36 = arith.addf %25, %35 : vector<1x1xf32>
    %37 = arith.negf %36 : vector<1x1xf32>
    %38 = math.exp %37 : vector<1x1xf32>
    %cst_27 = arith.constant 1.000000e+00 : f32
    %39 = vector.broadcast %cst_27 : f32 to vector<1x1xf32>
    %40 = arith.addf %39, %38 : vector<1x1xf32>
    %41 = arith.divf %39, %40 : vector<1x1xf32>
    %42 = math.absf %33 : vector<1x1xf32>
    %43 = math.absf %41 : vector<1x1xf32>
    %44 = arith.addf %42, %43 : vector<1x1xf32>
    %cst_28 = arith.constant 9.99999996E-13 : f32
    %45 = vector.broadcast %cst_28 : f32 to vector<1x1xf32>
    %46 = arith.maximumf %44, %45 : vector<1x1xf32>
    %cst_29 = arith.constant 1.000000e+00 : f32
    %47 = vector.broadcast %cst_29 : f32 to vector<1x1xf32>
    %48 = arith.divf %47, %46 : vector<1x1xf32>
    %49 = arith.mulf %33, %48 : vector<1x1xf32>
    %50 = arith.mulf %41, %48 : vector<1x1xf32>
    %51 = tpu.concatenate %49, %50 in 1 : vector<1x1xf32>, vector<1x1xf32> -> vector<1x2xf32>
    %c0_30 = arith.constant 0 : index
    %c0_31 = arith.constant 0 : index
    %52 = vector.load %arg4[%c0_30, %c0_31] : memref<1x2xf32, #tpu.memory_space<vmem>>, vector<1x2xf32>
    tpu.vector_store %arg4[%c0_30, %c0_31], %51 {strides = array<i32>} : memref<1x2xf32, #tpu.memory_space<vmem>>, vector<1x2xf32>,
    return
  }
}

</mosaic_0001>

<bundles_post_ra>
// kernel: tpu_custom_call.1
= control target key start
LH: loop header
LB: loop body
LE: loop exit
PB: predicated region body
PF: predicated region fallthrough
CT: control target
= control target key end

     0   :  { %9 = vsyncpa [#allocation6], 0  ;;  %s327_s0 = inlined_call_operand.hbm [shape: f32[2], index: 0, kind: input, shape index: {}]   ;;  %s328_s1 = inlined_call_operand.vmem [shape: f32[2,64], index: 1, kind: input, shape index: {}]   ;;  %s329_s2 = inlined_call_operand.hbm [shape: f32[8,64], index: 2, kind: input, shape index: {}]   ;;  %s330_s3 = inlined_call_operand.vmem [shape: f32[8,64], index: 3, kind: input, shape index: {}]   ;;  %s331_s4 = inlined_call_operand.hbm [shape: f32[1,2], index: 4, kind: output, shape index: {}]  }
   0x1   :  { %10 = vsyncpa [#allocation5], 0  ;;  %s192_s17 = scalar_lea.hbm %s327_s0, 16 }
   0x2   :  { %p193_p0 = scmp.ne.s32.totalorder %s327_s0, %s192_s17  ;;  %p196_p1 = scmp.lt.u32.totalorder %s192_s17, %s327_s0 }
   0x4   :  { %p198_p2 = pnand %p196_p1, %p193_p0 }
   0x6   :  { %201 = shalt.err (!%p198_p2)
}
   0x7   :  { %s257_s22 = smov [#allocation4]  }
   0x8   :  { %18 = dma.hbm_to_smem %s327_s0, 16, %s257_s22, [#allocation6]  }
   0x9   :  { %249 = dma.done.wait [#allocation6], 16  }
   0xa   :  { %250 = vsyncadd [#allocation6], 4294967280 }
   0xb   :  { %24 = sfence }
   0xc   :  { %s25_s27 = scalar_lea.hbm %s329_s2, 112  ;;  %s258_s28 = smov [#allocation2]   ;;  %v173_v0 = vld [vmem:[%s330_s3 + $0x7] sm:$0x1] }
   0xd   :  { %s33_s29 = sshll.u32 %s258_s28, 4  ;;  %s226_s8 = scalar_lea.hbm %s329_s2, 128  ;;  %s34_s29 = int_to_ptr.vmem [resolvable:$true] %s33_s29 }
   0xe   :  { %p203_p3 = scmp.ne.s32.totalorder %s25_s27, %s226_s8  ;;  %p205_p4 = scmp.lt.u32.totalorder %s25_s27, %s329_s2 }
   0xf   :  { %p206_p5 = scmp.lt.u32.totalorder %s226_s8, %s226_s8  ;;  %p208_p7 = scmp.lt.u32.totalorder %s226_s8, %s25_s27 }
  0x11   :  { %p207_p6 = por %p206_p5, %p205_p4 }
  0x13   :  { %p209_p8 = por %p208_p7, %p207_p6 }
  0x15   :  { %p210_p9 = pnand %p209_p8, %p203_p3 }
  0x17   :  { %213 = shalt.err (!%p210_p9)  }
  0x18   :  { %s214_s10 = scalar_lea.vmem %s34_s29, 16  ;;  %s218_s11 = scalar_lea.vmem %s34_s29, 32 }
  0x19   :  { %p215_p10 = scmp.ne.s32.totalorder %s34_s29, %s214_s10  ;;  %p219_p11 = scmp.lt.s32.totalorder %s34_s29, %s34_s29 }
  0x1a   :  { %p220_p12 = scmp.lt.s32.totalorder %s218_s11, %s214_s10 }
  0x1c   :  { %p221_p13 = por %p220_p12, %p219_p11 }
  0x1e   :  { %p222_p0 = pnand %p221_p13, %p215_p10 }
  0x20   :  { %225 = shalt.err (!%p222_p0)  }
  0x21   :  { %36 = dma.hbm_to_vmem [thread:$0]  %s25_s27, 16, %s34_s29, [#allocation3] }
  0x22   :  { %58 = vst [vmem:[#allocation2 + $0x1] sm:$0x1] %v173_v0 }
  0x23   :  { %83 = vsyncadd [#allocation3 + $0x1], 16 }
  0x24   :  { %251 = dma.done.wait [#allocation3], 16 }
  0x25   :  { %252 = vsyncadd [#allocation3], 4294967280 }
  0x26   :  { %253 = dma.done.wait [#allocation3 + $0x1], 16 }
  0x27   :  { %254 = vsyncadd [#allocation3 + $0x1], 4294967280  ;;  %vm94_vm0 = vcmask 516096   ;;  %v89_v1 = vld [vmem:[#allocation2] sm:$0x1]  ;;  %s102_s14 = sld [smem:[#allocation4]] }
  0x28   :  { %v91_v2 = vld [vmem:[%s328_s1] sm:$0x1]  ;;  %v92_v5 = vld [vmem:[%s328_s1 + $0x1] sm:$0x1]  ;;  %s175_s15 = sld [smem:[#allocation4 + $0x1]]  ;;  %s259_s1 = smov [#allocation7]  }
  0x29   :  { %v90_v3 = vld [vmem:[#allocation2 + $0x1] sm:$0x1]  ;;  %v93_v4 = vmul.f32 %v91_v2, %v89_v1  ;;  %s138_s16 = sshll.u32 %s259_s1, 4  ;;  %vm128_vm1 = vcmask 7168   ;;  %vm130_vm2 = vcmask 8192   ;;  %s139_s16 = int_to_ptr.vmem [resolvable:$true] %s138_s16 }
  0x2a   :  { %v98_v6 = vmul.f32 %v92_v5, %v90_v3  ;;  %s227_s17 = scalar_lea.vmem %s139_s16, 16  ;;  %s231_s18 = scalar_lea.vmem %s139_s16, 32 }
  0x2b   :  { %v95_v7 = vsel %vm94_vm0, %v93_v4, 0.0  ;;  %p228_p1 = scmp.ne.s32.totalorder %s139_s16, %s227_s17  ;;  %p232_p2 = scmp.lt.s32.totalorder %s139_s16, %s139_s16 }
  0x2c   :  { %96 = vadd.xlane.f32.xlu0 %v95_v7  ;;  %v99_v8 = vsel %vm94_vm0, %v98_v6, 0.0  ;;  %p233_p3 = scmp.lt.s32.totalorder %s231_s18, %s227_s17 }
  0x2d   :  { %v103_v9 = vstv %s102_s14 }
  0x2e   :  { %v112_v12 = vstv %s175_s15  ;;  %p234_p4 = por %p233_p3, %p232_p2 }
  0x30   :  { %100 = vadd.xlane.f32.xlu0 %v99_v8  ;;  %p235_p5 = pnand %p234_p4, %p228_p1 }
  0xb9   :  { %v97_v10 = vpop.xlane.xlu0 %96 }
  0xba   :  { %v104_v11 = vadd.f32 %v103_v9, %v97_v10 }
  0xbc   :  { %v174_v13 = vmul.f32 -1.442695, %v104_v11 }
  0xbd   :  { %v101_v14 = vpop.xlane.xlu0 %100 }
  0xbe   :  { %182 = vpow2.f32 %v174_v13  ;;  %v113_v15 = vadd.f32 %v112_v12, %v101_v14 }
  0xc0   :  { %v176_v16 = vmul.f32 -1.442695, %v113_v15 }
  0xc2   :  { %184 = vpow2.f32 %v176_v16 }
  0xc8   :  { %v183_v17 = vpop.eup %182 }
  0xc9   :  { %v108_v18 = vadd.f32 1.0, %v183_v17 }
  0xcb   :  { %186 = vrcp.f32 %v108_v18 }
  0xcc   :  { %v185_v19 = vpop.eup %184 }
  0xcd   :  { %v117_v20 = vadd.f32 1.0, %v185_v19 }
  0xcf   :  { %188 = vrcp.f32 %v117_v20 }
  0xd5   :  { %v187_v21 = vpop.eup %186 }
  0xd6   :  { %v120_v23 = vand.u32 2147483647, %v187_v21 }
  0xd9   :  { %v189_v22 = vpop.eup %188 }
  0xda   :  { %v121_v24 = vand.u32 2147483647, %v189_v22 }
  0xdc   :  { %v122_v25 = vadd.f32 %v121_v24, %v120_v23 }
  0xde   :  { %v123_v26 = vmax.f32 %v122_v25, 1e-12 }
  0xe0   :  { %190 = vrcp.f32 %v123_v26 }
  0xea   :  { %v191_v27 = vpop.eup %190 }
  0xeb   :  { %v126_v28 = vmul.f32 %v191_v27, %v187_v21  ;;  %v127_v29 = vmul.f32 %v191_v27, %v189_v22 }
  0xed   :  { %v129_v30 = vsel %vm128_vm1, %v126_v28, %v127_v29 }
  0xee   :  { %131 = vst.msk [vmem:[#allocation7] sm:$0x1] %vm130_vm2, %v129_v30 }
  0xef   :  { %238 = shalt.err (!%p235_p5)
}
  0xf0   :  { %s239_s21 = scalar_lea.hbm %s331_s4, 16 }
  0xf1   :  { %p240_p6 = scmp.ne.s32.totalorder %s331_s4, %s239_s21  ;;  %p243_p7 = scmp.lt.u32.totalorder %s239_s21, %s331_s4 }
  0xf3   :  { %p245_p8 = pnand %p243_p7, %p240_p6 }
  0xf5   :  { %248 = shalt.err (!%p245_p8)
}
  0xf6   :  { %141 = dma.vmem_to_hbm [thread:$0]  %s139_s16, 16, %s331_s4, [#allocation5]  }
  0xf7   :  { %255 = dma.done.wait [#allocation5], 16  }
  0xf8   :  { %256 = vsyncadd [#allocation5], 4294967280 }
  0xf9   :  { %145 = vsyncpa [#allocation5], 1 }
  0xfa   :  { %146 = vsyncpa [#allocation6], 1 }
  0xfb   :  { %147 = vsyncmov [#allocation3] }
  0xfe   :  { %s148_s28 = vpop.sfrf %147 }
  0xff   :  { %p177_p9 = scmp.ne.s32.totalorder %s148_s28, 0 }
 0x101   :  { %152 = shalt.err (%p177_p9)  }
 0x102   :  { %154 = vsyncmov [#allocation3 + $0x1] }
 0x105   :  { %s155_s29 = vpop.sfrf %154 }
 0x106   :  { %p178_p10 = scmp.ne.s32.totalorder %s155_s29, 0 }
 0x108   :  { %159 = shalt.err (%p178_p10)  }

</bundles_post_ra>
